<compile_context>
chip_gen: v5e
topology: v5e:2x2
jax: 0.10.0
libtpu: 0.0.40
codegen_flags: <defaults>
</compile_context>

<pallas_src>
import functools
import math

import jax
import jax.numpy as jnp
import numpy as np
from jax import lax
from jax.experimental import pallas as pl
from jax.experimental.pallas import tpu as pltpu


def _conv_mm_kernel(x_ref, w_ref, b_ref, o_ref):
    # x_ref: (Nb, K, Mp)   im2col slab (K = Cin*KH*KW on sublanes, Mp on lanes)
    # w_ref: (Cout, K)     flattened weight
    # b_ref: (Cout, 1)     bias (broadcast over lanes)
    # o_ref: (Nb, Cout, Mp) lane-dense output
    w = w_ref[...]
    b = b_ref[...]
    nb = o_ref.shape[0]
    for i in range(nb):  # static unroll; Nb is small
        acc = jnp.dot(w, x_ref[i], preferred_element_type=jnp.float32)  # (Cout, Mp)
        o_ref[i] = (acc + b).astype(o_ref.dtype)


def map_conv2d(x_nchw, weight_oihw, bias, stride=(1, 1), padding=(0, 0),
               dilation=(1, 1), groups=1, *, batch_block=1):
    """Pallas implementation of MAPConv2d.forward.

    x_nchw:      (N, Cin, H, W)
    weight_oihw: (Cout, Cin, KH, KW)
    bias:        (Cout,)
    returns:     (N, Cout, Ho, Wo)
    """
    # TODO(synk): groups > 1 (grouped conv) is not implemented (module default is 1).
    assert groups == 1, "groups > 1 not supported"

    N, Cin, H, W = x_nchw.shape
    Cout, Cin_w, KH, KW = weight_oihw.shape
    assert Cin == Cin_w
    sh, sw = stride
    ph, pw = padding
    dh, dw = dilation
    Ho = (H + 2 * ph - dh * (KH - 1) - 1) // sh + 1
    Wo = (W + 2 * pw - dw * (KW - 1) - 1) // sw + 1
    M = Ho * Wo
    K = Cin * KH * KW
    Mp = ((M + 127) // 128) * 128  # pad lane axis to a multiple of 128 (dense stores)

    Nb = batch_block
    assert N % Nb == 0, "batch must be divisible by batch_block"

    # --- wrapper-side layout plumbing (done once, by XLA) ----------------------
    x_pad = jnp.pad(x_nchw, ((0, 0), (0, 0), (ph, ph), (pw, pw)))  # (N, Cin, Hp, Wp)

    # im2col: one strided slice per kernel tap; stride/dilation handled here, not
    # in the kernel's hot path.  Tap order (kh*KW + kw) matches the weight reshape.
    taps = []
    for kh in range(KH):
        for kw in range(KW):
            h0, w0 = kh * dh, kw * dw
            taps.append(lax.slice(
                x_pad,
                (0, 0, h0, w0),
                (N, Cin, h0 + (Ho - 1) * sh + 1, w0 + (Wo - 1) * sw + 1),
                (1, 1, sh, sw)))                                   # (N, Cin, Ho, Wo)
    x_col = jnp.stack(taps, axis=2)                                # (N, Cin, KH*KW, Ho, Wo)
    x_col = x_col.reshape(N, K, M)                                 # K ordered (cin, kh, kw)
    if Mp != M:
        x_col = jnp.pad(x_col, ((0, 0), (0, 0), (0, Mp - M)))

    w2d = weight_oihw.reshape(Cout, K)                             # (cin, kh, kw) order matches
    b2d = bias.reshape(Cout, 1)

    # --- Pallas call ------------------------------------------------------------
    out = pl.pallas_call(
        _conv_mm_kernel,
        out_shape=jax.ShapeDtypeStruct((N, Cout, Mp), x_nchw.dtype),
        grid_spec=pltpu.PrefetchScalarGridSpec(
            num_scalar_prefetch=0,
            grid=(N // Nb,),
            in_specs=[
                pl.BlockSpec((Nb, K, Mp), lambda n: (n, 0, 0)),
                pl.BlockSpec((Cout, K), lambda n: (0, 0)),
                pl.BlockSpec((Cout, 1), lambda n: (0, 0)),
            ],
            out_specs=pl.BlockSpec((Nb, Cout, Mp), lambda n: (n, 0, 0)),
        ),
        compiler_params=pltpu.CompilerParams(
            dimension_semantics=("parallel",)),
    )(x_col, w2d, b2d)

    # Already channel-major: just drop the lane padding and un-flatten spatial.
    return out[:, :, :M].reshape(N, Cout, Ho, Wo)


if __name__ == "__main__":
    # MAPConv2d(in_channels=4, out_channels=8, kernel_size=3, stride=1, padding=1, bias=True)
    in_channels, out_channels, kernel_size = 4, 8, 3
    stride, padding = (1, 1), (1, 1)
    N, H, W = 2, 16, 16

    key = jax.random.PRNGKey(0)
    k_x, k_w, k_b = jax.random.split(key, 3)

    # Deterministic parameter init matching reset_parameters():
    #   kaiming_normal(weight, mode='fan_in') -> std = sqrt(2 / fan_in)
    #   bias ~ N(0, 0.01)
    fan_in = in_channels * kernel_size * kernel_size
    w_std = math.sqrt(2.0 / fan_in)
    weight = jax.random.normal(
        k_w, (out_channels, in_channels, kernel_size, kernel_size),
        dtype=jnp.float32) * w_std
    bias = jax.random.normal(k_b, (out_channels,), dtype=jnp.float32) * 0.01

    x = jax.random.normal(k_x, (N, in_channels, H, W), dtype=jnp.float32)

    out = map_conv2d(x, weight, bias, stride=stride, padding=padding)
    out = jax.block_until_ready(out)

    # Reference check against XLA's conv (same semantics as F.conv2d).
    ref = jax.lax.conv_general_dilated(
        x, weight, window_strides=stride, padding=[(1, 1), (1, 1)],
        dimension_numbers=("NCHW", "OIHW", "NCHW"))
    ref = ref + bias.reshape(1, out_channels, 1, 1)
    assert out.shape == (N, out_channels, H, W)
    np.testing.assert_allclose(np.asarray(out), np.asarray(ref), rtol=1e-5, atol=1e-5)

    print("KERNEL_OK")
</pallas_src>

<mosaic_0001>
module attributes {stable_mosaic.version = 11 : i64} {
  func.func @_conv_mm_kernel(%arg0: i32, %arg1: memref<1x36x256xf32, #tpu.memory_space<vmem>>, %arg2: memref<8x36xf32, #tpu.memory_space<vmem>>, %arg3: memref<8x1xf32, #tpu.memory_space<vmem>>, %arg4: memref<1x8x256xf32, #tpu.memory_space<vmem>>) attributes {dimension_semantics = [#tpu.dimension_semantics<parallel>], iteration_bounds = array<i64: 2>, scalar_prefetch = 0 : i64, scratch_operands = 0 : i64, tpu.core_type = #tpu.core_type<tc>, window_params = [{transform_indices = @transform_0, window_bounds = array<i64: 1, 36, 256>}, {pipeline_mode = #tpu.pipeline_mode<synchronous>, transform_indices = @transform_1, window_bounds = array<i64: 8, 36>}, {pipeline_mode = #tpu.pipeline_mode<synchronous>, transform_indices = @transform_2, window_bounds = array<i64: 8, 1>}, {transform_indices = @transform_3, window_bounds = array<i64: 1, 8, 256>}]} {
    %c0 = arith.constant 0 : index
    %c0_0 = arith.constant 0 : index
    %0 = vector.load %arg2[%c0, %c0_0] : memref<8x36xf32, #tpu.memory_space<vmem>>, vector<8x36xf32>
    %c0_1 = arith.constant 0 : index
    %c0_2 = arith.constant 0 : index
    %1 = vector.load %arg3[%c0_1, %c0_2] : memref<8x1xf32, #tpu.memory_space<vmem>>, vector<8x1xf32>
    %c0_3 = arith.constant 0 : index
    %c0_4 = arith.constant 0 : index
    %c0_5 = arith.constant 0 : index
    %2 = vector.load %arg1[%c0_3, %c0_4, %c0_5] : memref<1x36x256xf32, #tpu.memory_space<vmem>>, vector<1x36x256xf32>
    %3 = vector.shape_cast %2 : vector<1x36x256xf32> to vector<36x256xf32>
    %cst = arith.constant dense<0.000000e+00> : vector<8x256xf32>
    %4 = tpu.matmul %0, %3, %cst {dimension_numbers = #tpu.dot_dimension_numbers<[1], [0], [0], [1], [0, 0, 1, 1], [], []>} : vector<8x36xf32>, vector<36x256xf32>, vector<8x256xf32> -> vector<8x256xf32>
    %5 = vector.broadcast %1 : vector<8x1xf32> to vector<8x256xf32>
    %6 = arith.addf %4, %5 : vector<8x256xf32>
    %c0_6 = arith.constant 0 : index
    %c0_7 = arith.constant 0 : index
    %c0_8 = arith.constant 0 : index
    %7 = vector.load %arg4[%c0_6, %c0_7, %c0_8] : memref<1x8x256xf32, #tpu.memory_space<vmem>>, vector<1x8x256xf32>
    %8 = vector.shape_cast %7 : vector<1x8x256xf32> to vector<8x256xf32>
    %9 = vector.shape_cast %6 : vector<8x256xf32> to vector<1x8x256xf32>
    tpu.vector_store %arg4[%c0_6, %c0_7, %c0_8], %9 {strides = array<i32>} : memref<1x8x256xf32, #tpu.memory_space<vmem>>, vector<1x8x256xf32>,
    return
  }
  func.func @transform_0(%arg0: i32) -> (i32, i32, i32) {
    %c0_i32 = arith.constant 0 : i32
    %c0_i32_0 = arith.constant 0 : i32
    %c0_i32_1 = arith.constant 0 : i32
    return %arg0, %c0_i32, %c0_i32_0 : i32, i32, i32
  }
  func.func @transform_1(%arg0: i32) -> (i32, i32) {
    %c0_i32 = arith.constant 0 : i32
    %c0_i32_0 = arith.constant 0 : i32
    %c0_i32_1 = arith.constant 0 : i32
    return %c0_i32, %c0_i32_0 : i32, i32
  }
  func.func @transform_2(%arg0: i32) -> (i32, i32) {
    %c0_i32 = arith.constant 0 : i32
    %c0_i32_0 = arith.constant 0 : i32
    %c0_i32_1 = arith.constant 0 : i32
    return %c0_i32, %c0_i32_0 : i32, i32
  }
  func.func @transform_3(%arg0: i32) -> (i32, i32, i32) {
    %c0_i32 = arith.constant 0 : i32
    %c0_i32_0 = arith.constant 0 : i32
    %c0_i32_1 = arith.constant 0 : i32
    return %arg0, %c0_i32, %c0_i32_0 : i32, i32, i32
  }
}

</mosaic_0001>

<bundles_post_ra>
// kernel: tpu_custom_call.1
= control target key start
LH: loop header
LB: loop body
LE: loop exit
PB: predicated region body
PF: predicated region fallthrough
CT: control target
= control target key end

     0   :  { %8 = vsyncpa [#allocation3], 0  ;;  %s549_s0 = inlined_call_operand.vmem [shape: f32[2,36,256], index: 0, kind: input, shape index: {}]   ;;  %s550_s1 = inlined_call_operand.vmem [shape: f32[8,36], index: 1, kind: input, shape index: {}]   ;;  %s551_s2 = inlined_call_operand.vmem [shape: f32[8,1], index: 2, kind: input, shape index: {}]   ;;  %s552_s3 = inlined_call_operand.hbm [shape: f32[2,8,256], index: 3, kind: output, shape index: {}]  }
   0x1   :  { %10 = vsyncpa [#allocation3 + $0x1], 0  ;;  %s458_s12 = smov 0   ;;  %s460_s13 = smov 0  }
   0x2   :  { %s462_s14 = smov 0   ;;  %s464_s15 = smov 0  }
   0x3 LB: > { %s479_s16 = sadd.s32 4294967295, %s435_s15   ;;  %s315_s17 = sadd.s32 4294967294, %s435_s15   ;;  %s435_s15 = sphi %s464_s15, %s558_s15   ;;  %s431_s14 = sphi %s462_s14, %s557_s14   ;;  %s427_s13 = sphi %s460_s13, %s556_s13   ;;  %s423_s12 = sphi %s458_s12, %s555_s12  }
   0x4   : > { %s483_s18 = sadd.s32 1, %s435_s15   ;;  %s91_s19 = sadd.s32 1, %s431_s14 }
   0x5   : > { %s88_s20 = ssub.s32 %s435_s15, %s483_s18  ;;  %p101_p0 = scmp.ne.s32.totalorder %s431_s14, %s427_s13 }
   0x6   : > { %p89_p1 = scmp.eq.s32.totalorder %s88_s20, 0  ;;  %p102_p2 = scmp.eq.s32.totalorder %s479_s16, 1 }
   0x7   : > { %p107_p3 = scmp.ne.s32.totalorder %s427_s13, %s423_s12  ;;  %p108_p4 = scmp.eq.s32.totalorder %s315_s17, 1 }
   0x8   : > { %s494_s21 = scalar_select %p89_p1, %s431_s14, %s91_s19  }
   0x9   : > { %p496_p5 = por %p102_p2, %p101_p0  ;;  %p500_p6 = por %p108_p4, %p107_p3 }
   0xa   : > { %p318_p7 = scmp.ge.s32.totalorder %s435_s15, 1  ;;  %p140_p8 = scmp.lt.s32.totalorder %s435_s15, 3 }
   0xc   : > { %p141_p9 = pnand %p318_p7, %p140_p8 }
   0xd   : > { %p164_p10 = scmp.lt.s32.totalorder (!%p141_p9), %s479_s16, 1  ;;  %s161_s6 = sand.u32 (!%p141_p9), 1, %s427_s13  }
   0xe   : > { %144 = sbr.rel (%p141_p9) target bundleno = 166 (0xa6), region = 32  ;;  %s319_s7 = sshll.u32 (!%p141_p9), %s161_s6, 4 }
   0xf   : > { %s330_s8 = sshll.u32 (!%p141_p9), %s479_s16, 4  ;;  %s163_s17 = scalar_lea.vmem (!%p141_p9), [#allocation2], %s319_s7 }
  0x10   : > { %s251_s11 = scalar_lea.hbm (!%p141_p9), %s552_s3, %s330_s8  ;;  %s253_s19 = sshll.u32 (!%p141_p9), %s163_s17, 4  ;;  %s254_s19 = int_to_ptr.vmem [resolvable:$true] %s253_s19 }
  0x11   : > { %s255_s20 = sshll.u32 (!%p141_p9), %s251_s11, 4  ;;  %s240_s24 = scalar_lea.sflag (!%p141_p9), [#allocation3], %s161_s6  ;;  %s256_s20 = int_to_ptr.hbm [resolvable:$true] %s255_s20 }
  0x12   : > { %s387_s25 = sshra.s32 (!%p141_p9), %s256_s20, 4  ;;  %s393_s28 = scalar_lea.hbm (!%p141_p9), %s552_s3, 32  ;;  %s388_s25 = int_to_ptr.hbm [resolvable:$true] %s387_s25 }
  0x13   : > { %v170_v0 = vld [vmem:[%s551_s2] sm:$0xff]  ;;  %v437_v1 = vmov 0   ;;  %s165_s26 = scalar_select %p164_p10, %s479_s16, 1  ;;  %vm190_vm0 = vcmask 1043456   ;;  %vm186_vm1 = vcmask 293888  }
  0x14   : > { %372 = vset.pattern.permute.xlu0 %v437_v1  ;;  %v169_v12 = vld [vmem:[%s550_s1] sm:$0xff]  ;;  %s389_s16 = scalar_lea.hbm %s388_s25, 16  ;;  %p394_p0 = scmp.lt.s32.totalorder %s388_s25, %s552_s3 }
  0x15   : > { %183 = vperm.xlu0 %372, %v170_v0   ;;  %s331_s27 = smul.u32 80, %s165_s26  ;;  %p390_p11 = scmp.ne.s32.totalorder %s388_s25, %s389_s16 }
  0x16   : > { %p395_p1 = scmp.lt.s32.totalorder %s393_s28, %s389_s16 }
  0x17   : > { %s168_s30 = scalar_lea.vmem %s549_s0, %s331_s27  ;;  %p391_p12 = pnand %p390_p11, %p496_p5 }
  0x18   : > { %v179_v2 = vld [vmem:[%s168_s30 + $0x40] sm:$0xf]  ;;  %v180_v3 = vld [vmem:[%s168_s30 + $0x48] sm:$0xf]  ;;  %v177_v4 = vld [vmem:[%s168_s30 + $0x30] sm:$0xff]  ;;  %p396_p2 = por %p395_p1, %p394_p0 }
  0x19   : > { %321 = vmatpush.msk.msra.mxu0 %vm190_vm0, %v179_v2  ;;  %323 = vmatpush.msk.msra.mxu1 %vm190_vm0, %v180_v3  ;;  %v178_v5 = vld [vmem:[%s168_s30 + $0x38] sm:$0xff]  ;;  %v175_v6 = vld [vmem:[%s168_s30 + $0x20] sm:$0xff]  ;;  %v176_v7 = vld [vmem:[%s168_s30 + $0x28] sm:$0xff]  ;;  %p392_p13 = pneg %p391_p12 }
  0x1a   : > { %v173_v8 = vld [vmem:[%s168_s30 + $0x10] sm:$0xff]  ;;  %v174_v9 = vld [vmem:[%s168_s30 + $0x18] sm:$0xff]  ;;  %v171_v10 = vld [vmem:[%s168_s30] sm:$0xff] }
  0x1b   : > { %209 = vmatpush.msra.mxu0 %v177_v4  ;;  %229 = vmatpush.msra.mxu1 %v178_v5  ;;  %v172_v11 = vld [vmem:[%s168_s30 + $0x8] sm:$0xff]  ;;  %p397_p3 = pnand %p396_p2, %p392_p13 }
  0x1d   : > { %210 = vmatpush.msra.mxu0 %v175_v6  ;;  %230 = vmatpush.msra.mxu1 %v176_v7 }
  0x1f   : > { %211 = vmatpush.msra.mxu0 %v173_v8  ;;  %231 = vmatpush.msra.mxu1 %v174_v9 }
  0x21   : > { %212 = vmatpush.msra.mxu0 %v171_v10  ;;  %232 = vmatpush.msra.mxu1 %v172_v11 }
  0x22   : > { %322 = vmatmul.msk.f32.vlgmr.msra.gmra.mxu0 %vm186_vm1, %v169_v12  ;;  %324 = vmatmul.msk.f32.vlgmr.msra.gmra.mxu1 %vm186_vm1, %v169_v12 }
  0x87   : > { %v184_v13 = vpop.permute.xlu0 %183 }
  0x9f   : > { %v214_v14 = vpop.f32.mrf.mxu0  ;;  %v234_v15 = vpop.f32.mrf.mxu1 }
  0xa0   : > { %v215_v16 = vadd.f32 %v214_v14, %v184_v13  ;;  %v235_v17 = vadd.f32 %v234_v15, %v184_v13 }
  0xa2   : > { %237 = vst [vmem:[%s163_s17] sm:$0xff] %v215_v16 }
  0xa3   : > { %238 = vst [vmem:[%s163_s17 + $0x8] sm:$0xff] %v235_v17 }
  0xa4   : > { %400 = shalt.err (!%p397_p3)
}
  0xa5   : > { %332 = dma.vmem_to_hbm [thread:$0]  (%p496_p5), %s254_s19, 256, %s256_s20, %s240_s24  }
  0xa6 PF: > { %p338_p4 = scmp.ge.s32.totalorder %s435_s15, 2  ;;  %s267_s4 = sand.u32 1, %s423_s12  }
  0xa7   : > { %s268_s5 = scalar_lea.sflag [#allocation3], %s267_s4 }
  0xa8   : > { %p335_p7 = pnand %p338_p4, %p500_p6 }
  0xaa   : > { %p336_p8 = pneg %p335_p7 }
  0xac   : > { %418 = dma.done.wait (%p336_p8), %s268_s5, 256  }
  0xad   : > { %420 = vsyncadd (%p336_p8), %s268_s5, 4294967040  ;;  %p13_p9 = scmp.ge.s32.totalorder %s483_s18, 4   ;;  %s555_s12 = smov %s427_s13 }
  0xae   : > { %s556_s13 = smov %s431_s14  ;;  %s557_s14 = smov %s494_s21 }
  0xaf   : > { %s558_s15 = smov %s483_s18  ;;  %15 = sbr.rel (!%p13_p9) target bundleno = 3 (0x3), region = 67 }
  0xb4   :  { %274 = vsyncpa [#allocation3], 1 }
  0xb5   :  { %276 = vsyncpa [#allocation3 + $0x1], 1 }

</bundles_post_ra>
